<compile_context>
chip_gen: v6e
topology: v6e:2x2x1
jax: 0.10.0
libtpu: 0.0.40
codegen_flags: <defaults>
</compile_context>

<pallas_src>
import functools

import jax
import jax.numpy as jnp
from jax.experimental import pallas as pl
from jax.experimental.pallas import tpu as pltpu


def _round_up(a, b):
    return (a + b - 1) // b * b


def _embedding_dropout_kernel(*refs, drop_threshold, drop_scale, apply_dropout):
    if apply_dropout:
        idx_ref, table_ref, bits_ref, o_ref = refs
    else:
        idx_ref, table_ref, o_ref = refs
        bits_ref = None

    idx = idx_ref[...]                                      # (TN, 1) int32
    tn = idx.shape[0]
    v = table_ref.shape[0]

    # Row gather as a one-hot matmul on the MXU: (TN, V) @ (V, Dp) -> (TN, Dp).
    col = jax.lax.broadcasted_iota(jnp.int32, (tn, v), 1)
    onehot = (idx == col).astype(table_ref.dtype)
    out = jnp.dot(onehot, table_ref[...], preferred_element_type=jnp.float32)

    if apply_dropout:
        # Inverted dropout: keep iff bits >= p * 2^32 (integer threshold).
        keep = bits_ref[...] >= jnp.uint32(drop_threshold)
        out = jnp.where(keep, out * drop_scale, 0.0)

    o_ref[...] = out.astype(o_ref.dtype)


def categorical_embedding(x, table, *, p=0.1, training=False, rng=None):
    """Forward of CategoricalEmbedding: dropout(embedding(x))."""
    B, S = x.shape
    V, D = table.shape
    N = B * S

    assert 0.0 <= float(p) < 1.0
    apply_dropout = bool(training) and float(p) > 0.0

    # Lane-dense output: pad embedding dim to a multiple of 128.
    Dp = _round_up(D, 128)
    table_p = table if Dp == D else jnp.pad(table, ((0, 0), (0, Dp - D)))

    # Token tile: as big as possible (fills the MXU M-dim, amortizes per-step
    # overhead), capped at 512 rows to stay well inside VMEM at large D.
    TN = min(512, _round_up(N, 8))
    N_pad = _round_up(N, TN)

    idx = x.reshape(-1).astype(jnp.int32)
    if N_pad != N:
        idx = jnp.pad(idx, (0, N_pad - N))          # pad with a valid index
    idx = idx.reshape(N_pad, 1)

    in_specs = [
        pl.BlockSpec((TN, 1), lambda i: (i, 0)),    # token-index tile
        pl.BlockSpec((V, Dp), lambda i: (0, 0)),    # full table, VMEM-resident
    ]
    args = [idx, table_p]

    drop_threshold = 0
    drop_scale = 1.0
    if apply_dropout:
        if rng is None:
            rng = jax.random.PRNGKey(0)
        bits = jax.random.bits(rng, (N_pad, Dp), dtype=jnp.uint32)
        in_specs.append(pl.BlockSpec((TN, Dp), lambda i: (i, 0)))
        args.append(bits)
        drop_threshold = min(int(round(float(p) * 4294967296.0)), 4294967295)
        drop_scale = 1.0 / (1.0 - float(p))

    kernel = functools.partial(
        _embedding_dropout_kernel,
        drop_threshold=drop_threshold,
        drop_scale=drop_scale,
        apply_dropout=apply_dropout,
    )

    out_flat = pl.pallas_call(
        kernel,
        out_shape=jax.ShapeDtypeStruct((N_pad, Dp), table.dtype),
        grid_spec=pl.GridSpec(
            grid=(N_pad // TN,),
            in_specs=in_specs,
            out_specs=pl.BlockSpec((TN, Dp), lambda i: (i, 0)),
        ),
        compiler_params=pltpu.CompilerParams(
            dimension_semantics=("parallel",),
        ),
    )(*args)

    return out_flat[:N, :D].reshape(B, S, D)


if __name__ == "__main__":
    key = jax.random.PRNGKey(0)
    k_table, k_idx, k_drop = jax.random.split(key, 3)

    num_categories = 64
    embedding_dim = 32
    B, S = 2, 8  # N = 16 tokens

    # Deterministic synthetic parameters (nn.Embedding weight ~ N(0, 1)).
    table = jax.random.normal(k_table, (num_categories, embedding_dim), jnp.float32)
    x = jax.random.randint(k_idx, (B, S), 0, num_categories, dtype=jnp.int32)

    # Eval-mode forward (dropout = identity), matching module.eval() semantics.
    out = jax.block_until_ready(categorical_embedding(x, table, p=0.1, training=False))
    ref = table[x]
    assert out.shape == (B, S, embedding_dim)
    assert jnp.allclose(out, ref, atol=1e-5), "mismatch vs reference embedding lookup"

    # Training path: inverted dropout -> every element is 0 or ref/(1-p).
    p = 0.1
    out_tr = jax.block_until_ready(
        categorical_embedding(x, table, p=p, training=True, rng=k_drop)
    )
    assert out_tr.shape == (B, S, embedding_dim)
    scaled = ref * (1.0 / (1.0 - p))
    ok = jnp.logical_or(out_tr == 0.0, jnp.isclose(out_tr, scaled, atol=1e-5))
    assert bool(jnp.all(ok)), "dropout output not in {0, ref/(1-p)}"

    print("KERNEL_OK")
</pallas_src>

<mosaic_0001>
module attributes {stable_mosaic.version = 11 : i64} {
  func.func @_embedding_dropout_kernel(%arg0: i32, %arg1: memref<16x1xi32, #tpu.memory_space<vmem>>, %arg2: memref<64x128xf32, #tpu.memory_space<vmem>>, %arg3: memref<16x128xf32, #tpu.memory_space<vmem>>) attributes {dimension_semantics = [#tpu.dimension_semantics<parallel>], iteration_bounds = array<i64: 1>, scalar_prefetch = 0 : i64, scratch_operands = 0 : i64, tpu.core_type = #tpu.core_type<tc>, window_params = [{transform_indices = @transform_0, window_bounds = array<i64: 16, 1>}, {pipeline_mode = #tpu.pipeline_mode<synchronous>, transform_indices = @transform_1, window_bounds = array<i64: 64, 128>}, {transform_indices = @transform_2, window_bounds = array<i64: 16, 128>}]} {
    %c0 = arith.constant 0 : index
    %c0_0 = arith.constant 0 : index
    %0 = vector.load %arg1[%c0, %c0_0] : memref<16x1xi32, #tpu.memory_space<vmem>>, vector<16x1xi32>
    %1 = tpu.iota {dimensions = array<i32: 1>} : vector<16x64xi32>
    %2 = vector.broadcast %0 : vector<16x1xi32> to vector<16x64xi32>
    %3 = arith.cmpi eq, %2, %1 : vector<16x64xi32>
    %4 = arith.extui %3 : vector<16x64xi1> to vector<16x64xi32>
    %5 = arith.sitofp %4 : vector<16x64xi32> to vector<16x64xf32>
    %c0_1 = arith.constant 0 : index
    %c0_2 = arith.constant 0 : index
    %6 = vector.load %arg2[%c0_1, %c0_2] : memref<64x128xf32, #tpu.memory_space<vmem>>, vector<64x128xf32>
    %cst = arith.constant dense<0.000000e+00> : vector<16x128xf32>
    %7 = tpu.matmul %5, %6, %cst {dimension_numbers = #tpu.dot_dimension_numbers<[1], [0], [0], [1], [0, 0, 1, 1], [], []>} : vector<16x64xf32>, vector<64x128xf32>, vector<16x128xf32> -> vector<16x128xf32>
    %c0_3 = arith.constant 0 : index
    %c0_4 = arith.constant 0 : index
    %8 = vector.load %arg3[%c0_3, %c0_4] : memref<16x128xf32, #tpu.memory_space<vmem>>, vector<16x128xf32>
    tpu.vector_store %arg3[%c0_3, %c0_4], %7 {strides = array<i32>} : memref<16x128xf32, #tpu.memory_space<vmem>>, vector<16x128xf32>,
    return
  }
  func.func @transform_0(%arg0: i32) -> (i32, i32) {
    %c0_i32 = arith.constant 0 : i32
    %c0_i32_0 = arith.constant 0 : i32
    return %arg0, %c0_i32 : i32, i32
  }
  func.func @transform_1(%arg0: i32) -> (i32, i32) {
    %c0_i32 = arith.constant 0 : i32
    %c0_i32_0 = arith.constant 0 : i32
    %c0_i32_1 = arith.constant 0 : i32
    return %c0_i32, %c0_i32_0 : i32, i32
  }
  func.func @transform_2(%arg0: i32) -> (i32, i32) {
    %c0_i32 = arith.constant 0 : i32
    %c0_i32_0 = arith.constant 0 : i32
    return %arg0, %c0_i32 : i32, i32
  }
}

</mosaic_0001>

<bundles_post_ra>
// kernel: tpu_custom_call.1
= control target key start
LH: loop header
LB: loop body
LE: loop exit
PB: predicated region body
PF: predicated region fallthrough
CT: control target
= control target key end

     0   :  { %7 = vsyncpa [#allocation3], 0  ;;  %s274_s0 = inlined_call_operand.vmem [shape: s32[16,1], index: 0, kind: input, shape index: {}]   ;;  %s275_s1 = inlined_call_operand.hbm [shape: f32[64,128], index: 1, kind: input, shape index: {}]   ;;  %s276_s2 = inlined_call_operand.hbm [shape: f32[16,128], index: 2, kind: output, shape index: {}]  }
   0x1   :  { %8 = vsyncpa [#allocation4], 0  ;;  %s235_s9 = smov [#allocation2]  }
   0x2   :  { %s16_s10 = sshll.u32 %s235_s9, 4  ;;  %s17_s10 = int_to_ptr.vmem [resolvable:$true] %s16_s10 }
   0x3   :  { %s199_s11 = scalar_lea.vmem %s17_s10, 1024  ;;  %p204_p1 = scmp.lt.s32.totalorder %s17_s10, %s17_s10 }
   0x4   :  { %p200_p0 = scmp.ne.s32.totalorder %s17_s10, %s199_s11  ;;  %p205_p2 = scmp.lt.s32.totalorder %s199_s11, %s199_s11 }
   0x6   :  { %p206_p3 = por %p205_p2, %p204_p1 }
   0x8   :  { %p207_p4 = pnand %p206_p3, %p200_p0 }
   0xa   :  { %210 = shalt.err (!%p207_p4)
}
   0xb   :  { %s236_s12 = smov 128   ;;  %s237_s13 = smov 8  }
   0xc   :  { %22 = dma.hbm_to_vmem [thread:$0]  %s275_s1, 1024, %s17_s10, [#allocation3], %s236_s12, %s236_s12, %s237_s13  }
   0xd   :  { %231 = dma.done.wait [#allocation3], 1024  }
   0xe   :  { %232 = vsyncadd [#allocation3], 4294966272  ;;  %v238_v0 = vmov 0   ;;  %v26_v1 = vld [vmem:[%s274_s0] sm:$0xff]  ;;  %v49_v2 = vld [vmem:[#allocation2 + $0x38] sm:$0xff]  ;;  %v28_v11 = vlaneseq  ;;  %vm50_vm0 = vcmask 523264  }
   0xf   :  { %190 = vset.pattern.permute.xlu0 %v238_v0  ;;  %165 = vmatprep.subr.mxu0 %v49_v2  ;;  %v48_v3 = vld [vmem:[#allocation2 + $0x30] sm:$0xff]  ;;  %v27_v4 = vld [vmem:[%s274_s0 + $0x8] sm:$0xff]  ;;  %v46_v6 = vld [vmem:[#allocation2 + $0x20] sm:$0xff]  ;;  %v239_v14 = vmov 0.0   ;;  %s240_s0 = smov [#allocation5]  }
  0x10   :  { %31 = vperm.xlu0 %190, %v26_v1   ;;  %166 = vmatpush3.msra.mxu0 %v49_v2  ;;  %v47_v5 = vld [vmem:[#allocation2 + $0x28] sm:$0xff]  ;;  %v45_v7 = vld [vmem:[#allocation2 + $0x18] sm:$0xff]  ;;  %v44_v8 = vld [vmem:[#allocation2 + $0x10] sm:$0xff]  ;;  %v29_v12 = vand.u32 127, %v28_v11  ;;  %s139_s1 = sshll.u32 %s240_s0, 4  ;;  %s140_s1 = int_to_ptr.vmem [resolvable:$true] %s139_s1 }
  0x11   :  { %167 = vmatprep.subr.mxu0 %v48_v3  ;;  %v43_v9 = vld [vmem:[#allocation2 + $0x8] sm:$0xff]  ;;  %v42_v10 = vld [vmem:[#allocation2] sm:$0xff]  ;;  %s211_s20 = scalar_lea.vmem %s140_s1, 256  ;;  %p216_p6 = scmp.lt.s32.totalorder %s140_s1, %s140_s1 }
  0x12   :  { %168 = vmatpush3.msra.mxu0 %v48_v3  ;;  %p212_p5 = scmp.ne.s32.totalorder %s140_s1, %s211_s20  ;;  %p217_p7 = scmp.lt.s32.totalorder %s211_s20, %s211_s20 }
  0x13   :  { %169 = vmatprep.subr.mxu0 %v47_v5 }
  0x14   :  { %34 = vperm.xlu0 %190, %v27_v4   ;;  %170 = vmatpush3.msra.mxu0 %v47_v5  ;;  %p218_p8 = por %p217_p7, %p216_p6 }
  0x15   :  { %171 = vmatprep.subr.mxu0 %v46_v6 }
  0x16   :  { %172 = vmatpush3.msra.mxu0 %v46_v6  ;;  %p219_p9 = pnand %p218_p8, %p212_p5 }
  0x17   :  { %173 = vmatprep.subr.mxu0 %v45_v7 }
  0x18   :  { %174 = vmatpush3.msra.mxu0 %v45_v7 }
  0x19   :  { %175 = vmatprep.subr.mxu0 %v44_v8 }
  0x1a   :  { %176 = vmatpush3.msra.mxu0 %v44_v8 }
  0x1b   :  { %177 = vmatprep.subr.mxu0 %v43_v9 }
  0x1c   :  { %178 = vmatpush3.msra.mxu0 %v43_v9 }
  0x1d   :  { %179 = vmatprep.subr.mxu0 %v42_v10 }
  0x1e   :  { %180 = vmatpush3.msra.mxu0 %v42_v10 }
  0x8b   :  { %v32_v13 = vpop.permute.xlu0 %31 }
  0x8c   :  { %vm36_vm1 = vcmp.eq.s32.totalorder %v32_v13, %v29_v12 }
  0x8d   :  { %v151_v15 = vsel %vm36_vm1, 1.0, %v239_v14 }
  0x8e   :  { %181 = vmatprep.mubr.msk.f32.mxu0 %vm50_vm0, %v151_v15 }
  0x8f   :  { %v35_v16 = vpop.permute.xlu0 %34 }
  0x90   :  { %vm37_vm2 = vcmp.eq.s32.totalorder %v35_v16, %v29_v12 }
  0x91   :  { %v152_v17 = vsel %vm37_vm2, 1.0, %v239_v14 }
  0x92   :  { %182 = vmatmul.mubr.msk.f32.vlgmr.msra.gmra.mxu0 %vm50_vm0, %v152_v17 }
 0x152   :  { %v183_v18 = vpop.f32.mrf.mxu0 }
 0x153   :  { %133 = vst [vmem:[#allocation5 + $0x8] sm:$0xff] %v183_v18 }
 0x154   :  { %v123_v19 = vpop.f32.mrf.mxu0 }
 0x155   :  { %132 = vst [vmem:[#allocation5] sm:$0xff] %v123_v19 }
 0x156   :  { %222 = shalt.err (!%p219_p9)
}
 0x157   :  { %145 = dma.vmem_to_hbm [thread:$0]  %s140_s1, 256, %s276_s2, [#allocation4], %s236_s12, %s236_s12, %s237_s13  }
 0x158   :  { %233 = dma.done.wait [#allocation4], 256  }
 0x159   :  { %234 = vsyncadd [#allocation4], 4294967040 }
 0x15a   :  { %149 = vsyncpa [#allocation3], 1 }
 0x15b   :  { %150 = vsyncpa [#allocation4], 1 }

</bundles_post_ra>
